<compile_context>
chip_gen: v6e
topology: v6e:2x2x1
jax: 0.10.0
libtpu: 0.0.40
codegen_flags: <defaults>
</compile_context>

<pallas_src>
import jax
import jax.numpy as jnp
from jax.experimental import pallas as pl
from jax.experimental.pallas import tpu as pltpu


def _round_up(x, m):
    return -(-x // m) * m


# ----------------------------- fused 1x1-conv + GAP -----------------------------

def _conv_gap_kernel(x_ref, w_ref, feat_ref, pool_ref, acc_ref):
    # x_ref: (1, tr, Cin)  w_ref: (Cin, Cout)  feat_ref: (1, tr, Cout)
    # pool_ref: (1, 1, Cout)  acc_ref: (1, Cout) VMEM scratch (sum over rows)
    r = pl.program_id(1)

    @pl.when(r == 0)
    def _():
        acc_ref[...] = jnp.zeros_like(acc_ref)

    f = jnp.dot(x_ref[0], w_ref[...], preferred_element_type=jnp.float32)
    feat_ref[0, :, :] = f
    acc_ref[...] += jnp.sum(f, axis=0, keepdims=True)   # sublane reduction (VPU)
    pool_ref[0, :, :] = acc_ref[...]                    # resident across r, final at last r


def pallas_conv1x1_gap(x_rows, w):
    """x_rows: (N, HW, Cin) channels-last; w: (Cin, Cout).
    Returns (feat (N, HW, Cout) f32, pooled mean (N, Cout) f32)."""
    x_rows = x_rows.astype(jnp.float32)
    w = w.astype(jnp.float32)
    N, HW, Cin = x_rows.shape
    Cout = w.shape[1]
    HWp = _round_up(HW, 8)
    tr = min(512, HWp)
    HWp = _round_up(HWp, tr)
    if HWp != HW:
        # zero rows contribute nothing to conv/GAP; tiny tensor (Cin channels)
        x_p = jnp.zeros((N, HWp, Cin), jnp.float32).at[:, :HW, :].set(x_rows)
    else:
        x_p = x_rows

    feat, pooled = pl.pallas_call(
        _conv_gap_kernel,
        out_shape=(jax.ShapeDtypeStruct((N, HWp, Cout), jnp.float32),
                   jax.ShapeDtypeStruct((N, 1, Cout), jnp.float32)),
        grid=(N, HWp // tr),
        in_specs=[pl.BlockSpec((1, tr, Cin), lambda n, r: (n, r, 0)),
                  pl.BlockSpec((Cin, Cout), lambda n, r: (0, 0))],
        out_specs=(pl.BlockSpec((1, tr, Cout), lambda n, r: (n, r, 0)),
                   pl.BlockSpec((1, 1, Cout), lambda n, r: (n, 0, 0))),
        scratch_shapes=[pltpu.VMEM((1, Cout), jnp.float32)],
        compiler_params=pltpu.CompilerParams(
            dimension_semantics=("parallel", "arbitrary")),
    )(x_p, w)

    if HWp != HW:
        feat = feat[:, :HW, :]
    pooled = pooled[:, 0, :] * (1.0 / float(HW))
    return feat, pooled


# ----------------------------- row-tiled matmul -----------------------------

def _matmul_kernel(a_ref, b_ref, o_ref):
    o_ref[...] = jnp.dot(a_ref[...], b_ref[...], preferred_element_type=jnp.float32)


def pallas_matmul(a, b, bm=256):
    """a: (M, K) @ b: (K, N) -> (M, N) f32.  Tiled over M; K/N loaded in full
    (both <= 128 in this model).  No host-side zero-padding of the operands."""
    a = a.astype(jnp.float32)
    b = b.astype(jnp.float32)
    M, K = a.shape
    N = b.shape[1]
    bm = M if M <= bm else bm
    return pl.pallas_call(
        _matmul_kernel,
        out_shape=jax.ShapeDtypeStruct((M, N), jnp.float32),
        grid=(pl.cdiv(M, bm),),
        in_specs=[pl.BlockSpec((bm, K), lambda i: (i, 0)),
                  pl.BlockSpec((K, N), lambda i: (0, 0))],
        out_specs=pl.BlockSpec((bm, N), lambda i: (i, 0)),
        compiler_params=pltpu.CompilerParams(dimension_semantics=("parallel",)),
    )(a, b)


# ----------------------------- row-wise L2 normalize -----------------------------

def _l2norm_kernel(x_ref, o_ref):
    x = x_ref[...]
    ss = jnp.sum(x * x, axis=-1, keepdims=True)
    # rsqrt(max(ss, eps^2)) == 1 / max(||x||, eps)  (torch F.normalize, eps=1e-12)
    o_ref[...] = x * jax.lax.rsqrt(jnp.maximum(ss, 1e-24))


def pallas_l2norm_rows(x, bm=512):
    x = x.astype(jnp.float32)
    M, C = x.shape
    bm = M if M <= bm else bm
    return pl.pallas_call(
        _l2norm_kernel,
        out_shape=jax.ShapeDtypeStruct((M, C), jnp.float32),
        grid=(pl.cdiv(M, bm),),
        in_specs=[pl.BlockSpec((bm, C), lambda i: (i, 0))],
        out_specs=pl.BlockSpec((bm, C), lambda i: (i, 0)),
        compiler_params=pltpu.CompilerParams(dimension_semantics=("parallel",)),
    )(x)


# ----------------------------- fused MoCo logits -----------------------------

def _moco_logits_kernel(q_ref, k_ref, queue_ref, pos_ref, neg_ref):
    q = q_ref[...]                                   # (bm, C) f32
    # negatives: bf16 MXU matmul with f32 accumulation, lane-dense (bm, bk) store
    neg_ref[...] = jnp.dot(q.astype(jnp.bfloat16), queue_ref[...],
                           preferred_element_type=jnp.float32)

    # positives only once per row tile; stored as a lane-dense (bm, 128) slab
    @pl.when(pl.program_id(1) == 0)
    def _():
        p = jnp.sum(q * k_ref[...], axis=-1, keepdims=True)
        pos_ref[...] = jnp.broadcast_to(p, pos_ref.shape)


def pallas_moco_logits(q, k, queue, bm=256, bk=1024):
    """q, k: (M, C) f32; queue: (C, K) (bf16 storage).
    Returns (l_pos (M, 1) f32, l_neg (M, K) f32), both unscaled (as the module's
    extras list requires); 1/T and the concat are applied outside, like torch."""
    q = q.astype(jnp.float32)
    k = k.astype(jnp.float32)
    queue = queue.astype(jnp.bfloat16)
    M, C = q.shape
    K = queue.shape[1]
    bm = M if M <= bm else bm
    bk = K if K <= bk else bk

    pos128, neg = pl.pallas_call(
        _moco_logits_kernel,
        out_shape=(jax.ShapeDtypeStruct((M, 128), jnp.float32),
                   jax.ShapeDtypeStruct((M, K), jnp.float32)),
        grid=(pl.cdiv(M, bm), pl.cdiv(K, bk)),
        in_specs=[pl.BlockSpec((bm, C), lambda i, j: (i, 0)),
                  pl.BlockSpec((bm, C), lambda i, j: (i, 0)),
                  pl.BlockSpec((C, bk), lambda i, j: (0, j))],
        out_specs=(pl.BlockSpec((bm, 128), lambda i, j: (i, 0)),
                   pl.BlockSpec((bm, bk), lambda i, j: (i, j))),
        compiler_params=pltpu.CompilerParams(
            dimension_semantics=("parallel", "arbitrary")),
    )(q, k, queue)
    return pos128[:, :1], neg


# ----------------------------- encoder stand-in -----------------------------

def encoder_forward(params, im):
    """Synthetic pose-net stand-in.  im: (N, 3, H, W) NCHW.
    Returns (feat_inv (N,128), feat_var (N, H/4, W/4, 128) NHWC, gap (N,128))."""
    N, C, H, W = im.shape
    h, w = H // 4, W // 4
    # stride-4 average pool, channels-last from the start (tiny 3-channel tensor)
    x = jnp.transpose(im, (0, 2, 3, 1)).reshape(N, h, 4, w, 4, C).mean(axis=(2, 4))
    x_rows = x.reshape(N, h * w, C)
    feat_rows, pooled = pallas_conv1x1_gap(x_rows, params["w_var"])   # fused conv + GAP
    feat_var = feat_rows.reshape(N, h, w, 128)                        # NHWC, no transposes
    feat_inv = pallas_matmul(pooled, params["w_inv"])
    return feat_inv, feat_var, pooled


# ----------------------------- _cal_pos (device-side, fixed shapes) -----------------------------

def _bilinear_axis(lo, hi, size, out):
    """Crop [lo, hi) resampled to `out` points, align_corners=True.
    Returns gather indices (N, out) x2 and fractional weights (N, out)."""
    crop = hi - lo
    span = jnp.maximum(crop - 1, 0).astype(jnp.float32)
    t = jnp.arange(out, dtype=jnp.float32) / float(out - 1)
    s = span[:, None] * t[None, :]
    s0 = jnp.floor(s)
    w1 = s - s0
    i0 = s0.astype(jnp.int32)
    i1 = jnp.minimum(i0 + 1, jnp.maximum(crop - 1, 0)[:, None])
    g0 = jnp.clip(lo[:, None] + i0, 0, size - 1)
    g1 = jnp.clip(lo[:, None] + i1, 0, size - 1)
    return g0, g1, w1


def _crop_resize_rows(feat, h0, h1, w0, w1, flip, valid, up=16):
    """feat: (N, H, W, C) NHWC.  Data-dependent crop -> bilinear upsample to
    (up, up) -> rows (N*up*up, C).  Fixed shapes (one compiled graph); empty
    crops produce zero rows.  Horizontal flip is folded into the gather indices
    (no full-map flip pass; flip flags are {0,1}).
    TODO(synk): gather stays in XLA — data-dependent indices are not
    expressible with a BlockSpec index_map without scalar-prefetch DMA."""
    N, H, W, C = feat.shape
    gy0, gy1, wy = _bilinear_axis(h0, h1, H, up)
    gx0, gx1, wx = _bilinear_axis(w0, w1, W, up)
    f = flip[:, None] > 0.5
    gx0 = jnp.where(f, (W - 1) - gx0, gx0)
    gx1 = jnp.where(f, (W - 1) - gx1, gx1)

    n_idx = jnp.arange(N)[:, None, None]

    def corner(gy, gx):
        return feat[n_idx, gy[:, :, None], gx[:, None, :], :]      # (N, up, up, C)

    v00 = corner(gy0, gx0)
    v01 = corner(gy0, gx1)
    v10 = corner(gy1, gx0)
    v11 = corner(gy1, gx1)
    wy_ = wy[:, :, None, None]
    wx_ = wx[:, None, :, None]
    val = ((1.0 - wy_) * ((1.0 - wx_) * v00 + wx_ * v01)
           + wy_ * ((1.0 - wx_) * v10 + wx_ * v11))
    val = val * valid[:, None, None, None].astype(val.dtype)
    return val.reshape(N * up * up, C)


def cal_pos(q_var, k_var, meta_q, meta_k, queue_var):
    """Dense positive / negative logits of CL_Model._cal_pos (NHWC feature maps)."""
    up = 16
    N, Hq, Wq, C = q_var.shape
    Hk, Wk = k_var.shape[1], k_var.shape[2]
    mq = meta_q.astype(jnp.float32)
    mk = meta_k.astype(jnp.float32)
    i_q, j_q, h_q, w_q, flip_q = mq[:, 0], mq[:, 1], mq[:, 2], mq[:, 3], mq[:, 4]
    i_k, j_k, h_k, w_k, flip_k = mk[:, 0], mk[:, 1], mk[:, 2], mk[:, 3], mk[:, 4]

    box_h_left = jnp.maximum(i_q, i_k)
    box_w_left = jnp.maximum(j_q, j_k)
    box_h_right = jnp.minimum(i_q + h_q, i_k + h_k)
    box_w_right = jnp.minimum(j_q + w_q, j_k + w_k)

    def bounds(lo_f, hi_f, off, sz, dim):
        # torch: int(dim * frac + 0.5) — float->int cast truncates toward zero
        b0 = (float(dim) * (lo_f - off) / sz + 0.5).astype(jnp.int32)
        b1 = (float(dim) * (hi_f - off) / sz + 0.5).astype(jnp.int32)
        return b0, b1

    qh0, qh1 = bounds(box_h_left, box_h_right, i_q, h_q, Hq)
    qw0, qw1 = bounds(box_w_left, box_w_right, j_q, w_q, Wq)
    kh0, kh1 = bounds(box_h_left, box_h_right, i_k, h_k, Hk)
    kw0, kw1 = bounds(box_w_left, box_w_right, j_k, w_k, Wk)

    valid = (qh1 > qh0) & (qw1 > qw0) & (kh1 > kh0) & (kw1 > kw0)

    q_rows = _crop_resize_rows(q_var, qh0, qh1, qw0, qw1, flip_q, valid, up)
    k_rows = _crop_resize_rows(k_var, kh0, kh1, kw0, kw1, flip_k, valid, up)

    # one batched normalize over all N*256 rows (single Pallas launch each)
    q_all = pallas_l2norm_rows(q_rows)
    k_all = jax.lax.stop_gradient(pallas_l2norm_rows(k_rows))

    l_pos_var, l_neg_var = pallas_moco_logits(q_all, k_all, queue_var)
    return l_pos_var, l_neg_var, q_all, k_all


# ----------------------------- CL_Model forward -----------------------------

def cl_model_forward(params_q, params_k, state, im_q, im_k, meta_q, meta_k,
                     m=0.999, T=0.2):
    K = state["queue_inv"].shape[1]
    N = im_q.shape[0]

    # query encoder
    q_inv, q_var, _ = encoder_forward(params_q, im_q)
    q_inv = pallas_l2norm_rows(q_inv)

    # momentum update of key encoder (torch: no_grad)
    params_k = {n: m * params_k[n] + (1.0 - m) * params_q[n] for n in params_k}

    # key encoder (batch shuffle/unshuffle elided: identity at world_size=1)
    k_inv, k_var, k_pool = encoder_forward(params_k, im_k)
    k_inv = jax.lax.stop_gradient(pallas_l2norm_rows(k_inv))
    k_var = jax.lax.stop_gradient(k_var)
    k_pool = jax.lax.stop_gradient(k_pool)

    # invariance branch
    l_pos_inv, l_neg_inv = pallas_moco_logits(q_inv, k_inv, state["queue_inv"])
    logits_inv = jnp.concatenate([l_pos_inv, l_neg_inv], axis=1) * (1.0 / T)
    labels_inv = jnp.zeros((logits_inv.shape[0],), jnp.int32)   # torch uses int64

    # variance (dense) branch
    l_pos_var, l_neg_var, q_all, k_all = cal_pos(
        q_var, k_var, meta_q, meta_k, state["queue_var"])
    logits_var = jnp.concatenate([l_pos_var, l_neg_var], axis=1) * (1.0 / T)
    labels_var = jnp.zeros((logits_var.shape[0],), jnp.int32)

    # pooled key for the var queue (GAP reused from the fused encoder kernel)
    k_var_pool = pallas_l2norm_rows(k_pool)

    # dequeue & enqueue (functional buffer update, all_gather elided)
    ptr = int(state["queue_ptr"])
    assert K % N == 0
    queue_inv = state["queue_inv"].at[:, ptr:ptr + N].set(
        k_inv.T.astype(state["queue_inv"].dtype))
    queue_var = state["queue_var"].at[:, ptr:ptr + N].set(
        k_var_pool.T.astype(state["queue_var"].dtype))
    new_state = {"queue_inv": queue_inv, "queue_var": queue_var,
                 "queue_ptr": (ptr + N) % K}

    return (logits_inv, labels_inv, logits_var, labels_var,
            [l_pos_inv, l_neg_inv, l_pos_var, l_neg_var], new_state, params_k)


# ----------------------------- demo -----------------------------

if __name__ == "__main__":
    key = jax.random.PRNGKey(0)
    k1, k2, k3, k4, k5, k6 = jax.random.split(key, 6)

    dim, Kq, batch = 128, 256, 2   # small queue for the demo (module default K=65536)
    im_q = jax.random.normal(k1, (batch, 3, 32, 32), jnp.float32)
    im_k = jax.random.normal(k2, (batch, 3, 32, 32), jnp.float32)
    # meta = [i, j, h, w, flip]
    meta_q = jnp.array([[0., 0., 8., 8., 0.],
                        [1., 1., 6., 6., 1.]], jnp.float32)
    meta_k = jnp.array([[2., 2., 8., 8., 0.],
                        [0., 0., 8., 8., 0.]], jnp.float32)

    params_q = {"w_var": 0.1 * jax.random.normal(k3, (3, dim), jnp.float32),
                "w_inv": 0.1 * jax.random.normal(k4, (dim, dim), jnp.float32)}
    params_k = dict(params_q)   # key encoder initialized as a copy of the query encoder

    qi = jax.random.normal(k5, (dim, Kq), jnp.float32)
    qv = jax.random.normal(k6, (dim, Kq), jnp.float32)
    # queues stored in bf16 (halves HBM/VMEM traffic of the big l_neg matmul)
    state = {
        "queue_inv": (qi / jnp.maximum(jnp.linalg.norm(qi, axis=0, keepdims=True),
                                       1e-12)).astype(jnp.bfloat16),
        "queue_var": (qv / jnp.maximum(jnp.linalg.norm(qv, axis=0, keepdims=True),
                                       1e-12)).astype(jnp.bfloat16),
        "queue_ptr": 0,
    }

    out = cl_model_forward(params_q, params_k, state, im_q, im_k, meta_q, meta_k)
    logits_inv, labels_inv, logits_var, labels_var, extras, new_state, _ = out
    jax.block_until_ready((logits_inv, logits_var,
                           new_state["queue_inv"], new_state["queue_var"]))

    assert logits_inv.shape == (batch, 1 + Kq)
    assert logits_var.shape == (batch * 16 * 16, 1 + Kq)
    assert labels_inv.shape == (batch,)
    assert labels_var.shape == (batch * 16 * 16,)
    assert extras[0].shape == (batch, 1) and extras[1].shape == (batch, Kq)
    assert extras[2].shape == (batch * 256, 1) and extras[3].shape == (batch * 256, Kq)
    print("KERNEL_OK")
</pallas_src>

<mosaic_0001>
module attributes {stable_mosaic.version = 11 : i64} {
  func.func @_conv_gap_kernel(%arg0: i32, %arg1: i32, %arg2: memref<1x64x3xf32, #tpu.memory_space<vmem>>, %arg3: memref<3x128xf32, #tpu.memory_space<vmem>>, %arg4: memref<1x64x128xf32, #tpu.memory_space<vmem>>, %arg5: memref<1x1x128xf32, #tpu.memory_space<vmem>>, %arg6: memref<1x128xf32, #tpu.memory_space<vmem>>) attributes {dimension_semantics = [#tpu.dimension_semantics<parallel>, #tpu.dimension_semantics<arbitrary>], iteration_bounds = array<i64: 2, 1>, scalar_prefetch = 0 : i64, scratch_operands = 1 : i64, tpu.core_type = #tpu.core_type<tc>, window_params = [{transform_indices = @transform_0, window_bounds = array<i64: 1, 64, 3>}, {pipeline_mode = #tpu.pipeline_mode<synchronous>, transform_indices = @transform_1, window_bounds = array<i64: 3, 128>}, {transform_indices = @transform_2, window_bounds = array<i64: 1, 64, 128>}, {transform_indices = @transform_3, window_bounds = array<i64: 1, 1, 128>}]} {
    %c0_i32 = arith.constant 0 : i32
    %0 = arith.cmpi eq, %arg1, %c0_i32 : i32
    %1 = arith.extui %0 : i1 to i32
    %c0_i32_0 = arith.constant 0 : i32
    %2 = arith.cmpi ne, %1, %c0_i32_0 : i32
    scf.if %2 {
      %cst_18 = arith.constant 0.000000e+00 : f32
      %19 = vector.broadcast %cst_18 : f32 to vector<1x128xf32>
      %c0_19 = arith.constant 0 : index
      %c0_20 = arith.constant 0 : index
      %20 = vector.load %arg6[%c0_19, %c0_20] : memref<1x128xf32, #tpu.memory_space<vmem>>, vector<1x128xf32>
      tpu.vector_store %arg6[%c0_19, %c0_20], %19 {strides = array<i32>} : memref<1x128xf32, #tpu.memory_space<vmem>>, vector<1x128xf32>,
    } else {
    }
    %c0 = arith.constant 0 : index
    %c0_1 = arith.constant 0 : index
    %c0_2 = arith.constant 0 : index
    %3 = vector.load %arg2[%c0, %c0_1, %c0_2] : memref<1x64x3xf32, #tpu.memory_space<vmem>>, vector<1x64x3xf32>
    %4 = vector.shape_cast %3 : vector<1x64x3xf32> to vector<64x3xf32>
    %c0_3 = arith.constant 0 : index
    %c0_4 = arith.constant 0 : index
    %5 = vector.load %arg3[%c0_3, %c0_4] : memref<3x128xf32, #tpu.memory_space<vmem>>, vector<3x128xf32>
    %cst = arith.constant dense<0.000000e+00> : vector<64x128xf32>
    %6 = tpu.matmul %4, %5, %cst {dimension_numbers = #tpu.dot_dimension_numbers<[1], [0], [0], [1], [0, 0, 1, 1], [], []>} : vector<64x3xf32>, vector<3x128xf32>, vector<64x128xf32> -> vector<64x128xf32>
    %c0_5 = arith.constant 0 : index
    %c0_6 = arith.constant 0 : index
    %c0_7 = arith.constant 0 : index
    %7 = vector.load %arg4[%c0_5, %c0_6, %c0_7] : memref<1x64x128xf32, #tpu.memory_space<vmem>>, vector<1x64x128xf32>
    %8 = vector.shape_cast %7 : vector<1x64x128xf32> to vector<64x128xf32>
    %9 = vector.shape_cast %6 : vector<64x128xf32> to vector<1x64x128xf32>
    tpu.vector_store %arg4[%c0_5, %c0_6, %c0_7], %9 {strides = array<i32>} : memref<1x64x128xf32, #tpu.memory_space<vmem>>, vector<1x64x128xf32>,
    %c0_8 = arith.constant 0 : index
    %c0_9 = arith.constant 0 : index
    %10 = vector.load %arg6[%c0_8, %c0_9] : memref<1x128xf32, #tpu.memory_space<vmem>>, vector<1x128xf32>
    %cst_10 = arith.constant dense<0.000000e+00> : vector<128xf32>
    %11 = vector.multi_reduction <add>, %6, %cst_10 [0] : vector<64x128xf32> to vector<128xf32>
    %12 = vector.shape_cast %11 : vector<128xf32> to vector<1x128xf32>
    %13 = arith.addf %10, %12 : vector<1x128xf32>
    %c0_11 = arith.constant 0 : index
    %c0_12 = arith.constant 0 : index
    %14 = vector.load %arg6[%c0_11, %c0_12] : memref<1x128xf32, #tpu.memory_space<vmem>>, vector<1x128xf32>
    tpu.vector_store %arg6[%c0_11, %c0_12], %13 {strides = array<i32>} : memref<1x128xf32, #tpu.memory_space<vmem>>, vector<1x128xf32>,
    %c0_13 = arith.constant 0 : index
    %c0_14 = arith.constant 0 : index
    %15 = vector.load %arg6[%c0_13, %c0_14] : memref<1x128xf32, #tpu.memory_space<vmem>>, vector<1x128xf32>
    %c0_15 = arith.constant 0 : index
    %c0_16 = arith.constant 0 : index
    %c0_17 = arith.constant 0 : index
    %16 = vector.load %arg5[%c0_15, %c0_16, %c0_17] : memref<1x1x128xf32, #tpu.memory_space<vmem>>, vector<1x1x128xf32>
    %17 = vector.shape_cast %16 : vector<1x1x128xf32> to vector<1x128xf32>
    %18 = vector.shape_cast %15 : vector<1x128xf32> to vector<1x1x128xf32>
    tpu.vector_store %arg5[%c0_15, %c0_16, %c0_17], %18 {strides = array<i32>} : memref<1x1x128xf32, #tpu.memory_space<vmem>>, vector<1x1x128xf32>,
    return
  }
  func.func @transform_0(%arg0: i32, %arg1: i32) -> (i32, i32, i32) {
    %c0_i32 = arith.constant 0 : i32
    %c0_i32_0 = arith.constant 0 : i32
    return %arg0, %arg1, %c0_i32 : i32, i32, i32
  }
  func.func @transform_1(%arg0: i32, %arg1: i32) -> (i32, i32) {
    %c0_i32 = arith.constant 0 : i32
    %c0_i32_0 = arith.constant 0 : i32
    %c0_i32_1 = arith.constant 0 : i32
    return %c0_i32, %c0_i32_0 : i32, i32
  }
  func.func @transform_2(%arg0: i32, %arg1: i32) -> (i32, i32, i32) {
    %c0_i32 = arith.constant 0 : i32
    %c0_i32_0 = arith.constant 0 : i32
    return %arg0, %arg1, %c0_i32 : i32, i32, i32
  }
  func.func @transform_3(%arg0: i32, %arg1: i32) -> (i32, i32, i32) {
    %c0_i32 = arith.constant 0 : i32
    %c0_i32_0 = arith.constant 0 : i32
    %c0_i32_1 = arith.constant 0 : i32
    return %arg0, %c0_i32, %c0_i32_0 : i32, i32, i32
  }
}

</mosaic_0001>

<bundles_post_ra>
// kernel: tpu_custom_call.1
= control target key start
LH: loop header
LB: loop body
LE: loop exit
PB: predicated region body
PF: predicated region fallthrough
CT: control target
= control target key end

     0   :  { %9 = vsyncpa [#allocation4], 0  ;;  %s922_s0 = inlined_call_operand.vmem [shape: f32[2,64,3], index: 0, kind: input, shape index: {}]   ;;  %s923_s1 = inlined_call_operand.vmem [shape: f32[3,128], index: 1, kind: input, shape index: {}]   ;;  %s924_s2 = inlined_call_operand.hbm [shape: f32[2,64,128], index: 2, kind: output, shape index: {0}]   ;;  %s925_s3 = inlined_call_operand.hbm [shape: f32[2,1,128], index: 3, kind: output, shape index: {1}]  }
   0x1   :  { %11 = vsyncpa [#allocation4 + $0x1], 0 }
   0x2   :  { %12 = vsyncpa [#allocation6], 0 }
   0x3   :  { %14 = vsyncpa [#allocation6 + $0x1], 0  ;;  %s770_s12 = smov 0   ;;  %s772_s13 = smov 0  }
   0x4   :  { %s774_s14 = smov 0   ;;  %s776_s15 = smov 0  }
   0x5   :  { %s778_s16 = smov 0   ;;  %s780_s17 = smov 0  }
   0x6 LB: > { %s524_s18 = sadd.s32 4294967295, %s743_s17   ;;  %s525_s19 = sadd.s32 4294967294, %s743_s17   ;;  %s743_s17 = sphi %s780_s17, %s20_s17   ;;  %s739_s16 = sphi %s778_s16, %s932_s16   ;;  %s735_s15 = sphi %s776_s15, %s931_s15   ;;  %s731_s14 = sphi %s774_s14, %s930_s14   ;;  %s727_s13 = sphi %s772_s13, %s929_s13   ;;  %s723_s12 = sphi %s770_s12, %s928_s12  }
   0x7   : > { %s32_s20 = sadd.s32 1, %s739_s16  ;;  %s90_s21 = sadd.s32 1, %s731_s14 }
   0x8   : > { %p34_p0 = scmp.ge.s32.totalorder %s32_s20, 2  ;;  %p100_p1 = scmp.ne.s32.totalorder %s731_s14, %s727_s13 }
   0x9   : > { %p101_p2 = scmp.eq.s32.totalorder %s524_s18, 1  ;;  %p106_p3 = scmp.ne.s32.totalorder %s727_s13, %s723_s12 }
   0xa   : > { %s934_s20 = smov (%p34_p0, %s32_s20), 0  ;;  %p107_p5 = scmp.eq.s32.totalorder %s525_s19, 1 }
   0xb   : > { %p810_p4 = por %p101_p2, %p100_p1  ;;  %s85_s23 = ssub.s32 %s739_s16, %s934_s20 }
   0xc   : > { %p528_p6 = scmp.ge.s32.totalorder %s743_s17, 1  ;;  %p88_p7 = scmp.eq.s32.totalorder %s85_s23, 0 }
   0xd   : > { %p817_p8 = por %p107_p5, %p106_p3  ;;  %p167_p9 = scmp.lt.s32.totalorder %s743_s17, 3 }
   0xe   : > { %s823_s25 = scalar_select %p88_p7, %s731_s14, %s90_s21  }
   0xf   : > { %p168_p10 = pnand %p528_p6, %p167_p9 }
  0x10   : > { %p200_p11 = scmp.lt.s32.totalorder (!%p168_p10), %s735_s15, 1  ;;  %s842_s6 = sand.u32 (!%p168_p10), 1, %s727_s13  }
  0x11   : > { %171 = sbr.rel (%p168_p10) target bundleno = 284 (0x11c), region = 28  ;;  %s529_s7 = sshll.u32 (!%p168_p10), %s842_s6, 6 }
  0x12   : > { %s192_s8 = scalar_lea.vmem (!%p168_p10), [#allocation3], %s529_s7  ;;  %s548_s9 = sshll.u32 (!%p168_p10), %s735_s15, 10 }
  0x13   : > { %s404_s10 = sshll.u32 (!%p168_p10), %s192_s8, 4  ;;  %s849_s19 = scalar_lea.hbm (!%p168_p10), %s924_s2, %s548_s9  ;;  %s851_s10 = int_to_ptr.vmem [resolvable:$true] %s404_s10 }
  0x14   : > { %s385_s21 = scalar_lea.sflag (!%p168_p10), [#allocation4], %s842_s6  ;;  %s637_s23 = scalar_lea.vmem (!%p168_p10), %s851_s10, 1024 }
  0x15   : > { %p638_p12 = scmp.ne.s32.totalorder (!%p168_p10), %s851_s10, %s637_s23  ;;  %s746_s26 = smov (!%p168_p10), [#allocation3]  }
  0x16   : > { %v223_v0 = vld [vmem:[%s923_s1] sm:$0x7]  ;;  %vm249_vm0 = vcmask 1042432   ;;  %s201_s28 = scalar_select %p200_p11, %s735_s15, 1  ;;  %vm224_vm1 = vcmask 23552   ;;  %v745_v9 = vmov 0.0  }
  0x17   : > { %558 = vmatprep.subr.msk.mxu0 %vm249_vm0, %v223_v0  ;;  %572 = vmatprep.subr.msk.mxu1 %vm249_vm0, %v223_v0  ;;  %214 = vst [vmem:[#allocation2] sm:$0x1] %v745_v9  ;;  %p639_p13 = pnand %p638_p12, %p810_p4  ;;  %s641_s27 = sshll.u32 %s746_s26, 4  ;;  %s642_s27 = int_to_ptr.vmem [resolvable:$false] %s641_s27 }
  0x18   : > { %559 = vmatpush3.msk.msra.mxu0 %vm249_vm0, %v223_v0  ;;  %573 = vmatpush3.msk.msra.mxu1 %vm249_vm0, %v223_v0  ;;  %s547_s29 = sshll.u32 %s201_s28, 6  ;;  %s643_s28 = scalar_lea.vmem %s642_s27, 2048 }
  0x19   : > { %s207_s5 = scalar_lea.vmem %s922_s0, %s547_s29  ;;  %p640_p0 = pneg %p639_p13 }
  0x1a   : > { %v215_v1 = vld [vmem:[%s207_s5] sm:$0xff]  ;;  %v216_v2 = vld [vmem:[%s207_s5 + $0x8] sm:$0xff]  ;;  %v217_v3 = vld [vmem:[%s207_s5 + $0x10] sm:$0xff]  ;;  %p644_p1 = scmp.lt.s32.totalorder %s851_s10, %s642_s27  ;;  %p645_p2 = scmp.lt.s32.totalorder %s643_s28, %s637_s23 }
  0x1b   : > { %560 = vmatprep.mubr.msk.f32.mxu0 %vm224_vm1, %v215_v1  ;;  %v219_v4 = vld [vmem:[%s207_s5 + $0x20] sm:$0xff]  ;;  %v220_v5 = vld [vmem:[%s207_s5 + $0x28] sm:$0xff]  ;;  %v221_v6 = vld [vmem:[%s207_s5 + $0x30] sm:$0xff] }
  0x1c   : > { %561 = vmatmul.mubr.msk.f32.vlgmr.msra.gmra.mxu0 %vm224_vm1, %v216_v2  ;;  %566 = vmatprep.mubr.msk.f32.mxu1 %vm224_vm1, %v219_v4  ;;  %v218_v7 = vld [vmem:[%s207_s5 + $0x18] sm:$0xff]  ;;  %p646_p3 = por %p645_p2, %p644_p1 }
  0x1d   : > { %563 = vmatprep.mubr.msk.f32.mxu0 %vm224_vm1, %v217_v3  ;;  %567 = vmatmul.mubr.msk.f32.vlgmr.msra.gmra.mxu1 %vm224_vm1, %v220_v5  ;;  %v222_v8 = vld [vmem:[%s207_s5 + $0x38] sm:$0xff] }
  0x1e   : > { %569 = vmatprep.mubr.msk.f32.mxu1 %vm224_vm1, %v221_v6  ;;  %p647_p5 = pnand %p646_p3, %p640_p0 }
  0x20   : > { %564 = vmatmul.mubr.msk.f32.gmra.mxu0 %vm224_vm1, %v218_v7 }
  0x21   : > { %570 = vmatmul.mubr.msk.f32.gmra.mxu1 %vm224_vm1, %v222_v8 }
  0xdc   : > { %v562_v10 = vpop.f32.mrf.mxu0 }
  0xdd   : > { %359 = vst [vmem:[%s192_s8 + $0x8] sm:$0xff] %v562_v10  ;;  %v568_v11 = vpop.f32.mrf.mxu1 }
  0xde   : > { %v319_v12 = vpop.f32.mrf.mxu0  ;;  %363 = vst [vmem:[%s192_s8 + $0x28] sm:$0xff] %v568_v11 }
  0xdf   : > { %358 = vst [vmem:[%s192_s8] sm:$0xff] %v319_v12  ;;  %v339_v13 = vpop.f32.mrf.mxu1  ;;  %v367_v15 = vadd.f32 %v562_v10, %v319_v12 }
  0xe0   : > { %v565_v14 = vpop.f32.mrf.mxu0  ;;  %362 = vst [vmem:[%s192_s8 + $0x20] sm:$0xff] %v339_v13 }
  0xe1   : > { %361 = vst [vmem:[%s192_s8 + $0x18] sm:$0xff] %v565_v14  ;;  %v571_v16 = vpop.f32.mrf.mxu1 }
  0xe2   : > { %v329_v17 = vpop.f32.mrf.mxu0  ;;  %365 = vst [vmem:[%s192_s8 + $0x38] sm:$0xff] %v571_v16 }
  0xe3   : > { %360 = vst [vmem:[%s192_s8 + $0x10] sm:$0xff] %v329_v17  ;;  %v368_v18 = vadd.f32 %v367_v15, %v329_v17  ;;  %v349_v19 = vpop.f32.mrf.mxu1 }
  0xe4   : > { %364 = vst [vmem:[%s192_s8 + $0x30] sm:$0xff] %v349_v19 }
  0xe5   : > { %v369_v20 = vadd.f32 %v565_v14, %v368_v18 }
  0xe6   : > { %650 = shalt.err (!%p647_p5)
}
  0xe7   : > { %s651_s29 = scalar_lea.hbm %s849_s19, 1024  ;;  %s655_s5 = scalar_lea.hbm %s924_s2, 2048 }
  0xe8   : > { %p652_p6 = scmp.ne.s32.totalorder %s849_s19, %s651_s29  ;;  %p656_p10 = scmp.lt.s32.totalorder %s849_s19, %s924_s2 }
  0xe9   : > { %p657_p11 = scmp.lt.s32.totalorder %s655_s5, %s651_s29 }
  0xea   : > { %p653_p7 = pnand %p652_p6, %p810_p4 }
  0xeb   : > { %p658_p12 = por %p657_p11, %p656_p10 }
  0xec   : > { %p654_p9 = pneg %p653_p7 }
  0xee   : > { %p659_p13 = pnand %p658_p12, %p654_p9 }
  0xf0   : > { %662 = shalt.err (!%p659_p13)
}
  0xf1   : > { %s747_s9 = smov 128   ;;  %s748_s11 = smov 8   ;;  %v370_v21 = vadd.f32 %v369_v20, %v339_v13  ;;  %v366_v30 = vld [vmem:[#allocation2] sm:$0x1] }
  0xf2   : > { %574 = dma.vmem_to_hbm [thread:$0]  (%p810_p4), %s851_s10, 1024, %s849_s19, %s385_s21, %s747_s9, %s747_s9, %s748_s11  }
  0xf3   : > { %v371_v22 = vadd.f32 %v568_v11, %v370_v21  ;;  %s544_s18 = sshll.u32 %s735_s15, 4  ;;  %s198_s23 = scalar_lea.vmem [#allocation5], %s842_s6 }
  0xf4   : > { %s420_s26 = sshll.u32 %s198_s23, 4  ;;  %s881_s19 = scalar_lea.hbm %s925_s3, %s544_s18  ;;  %s421_s26 = int_to_ptr.vmem [resolvable:$true] %s420_s26 }
  0xf5   : > { %v372_v23 = vadd.f32 %v371_v22, %v349_v19  ;;  %s390_s21 = scalar_lea.sflag [#allocation6], %s842_s6  ;;  %s663_s28 = scalar_lea.vmem %s421_s26, 16 }
  0xf6   : > { %p664_p0 = scmp.ne.s32.totalorder %s421_s26, %s663_s28  ;;  %s749_s29 = smov [#allocation5]  }
  0xf7   : > { %v373_v24 = vadd.f32 %v571_v16, %v372_v23  ;;  %s667_s30 = sshll.u32 %s749_s29, 4  ;;  %s668_s30 = int_to_ptr.vmem [resolvable:$false] %s667_s30 }
  0xf8   : > { %p665_p1 = pnand %p664_p0, %p810_p4  ;;  %s669_s15 = scalar_lea.vmem %s668_s30, 32 }
  0xf9   : > { %v374_v25 = vrot.slane %v373_v24, 4  ;;  %p670_p3 = scmp.lt.s32.totalorder %s421_s26, %s668_s30  ;;  %p671_p5 = scmp.lt.s32.totalorder %s669_s15, %s663_s28 }
  0xfa   : > { %p666_p2 = pneg %p665_p1 }
  0xfb   : > { %v375_v26 = vadd.f32 %v374_v25, %v373_v24  ;;  %p672_p6 = por %p671_p5, %p670_p3 }
  0xfd   : > { %v376_v27 = vrot.slane %v375_v26, 2  ;;  %p673_p7 = pnand %p672_p6, %p666_p2 }
  0xff   : > { %v377_v28 = vadd.f32 %v376_v27, %v375_v26 }
 0x101   : > { %v378_v29 = vrot.slane %v377_v28, 1 }
 0x103   : > { %v379_v31 = vadd.f32 %v378_v29, %v377_v28 }
 0x105   : > { %v380_v32 = vadd.f32 %v379_v31, %v366_v30 }
 0x107   : > { %381 = vst [vmem:[#allocation2] sm:$0x1] %v380_v32 }
 0x10e   : > { %v382_v33 = vld [vmem:[#allocation2] sm:$0x1] }
 0x10f   : > { %383 = vst [vmem:[%s198_s23] sm:$0x1] %v382_v33 }
 0x110   : > { %676 = shalt.err (!%p673_p7)
}
 0x111   : > { %s677_s4 = scalar_lea.hbm %s881_s19, 16  ;;  %s681_s7 = scalar_lea.hbm %s925_s3, 32 }
 0x112   : > { %p678_p9 = scmp.ne.s32.totalorder %s881_s19, %s677_s4  ;;  %p682_p12 = scmp.lt.s32.totalorder %s881_s19, %s925_s3 }
 0x113   : > { %p683_p13 = scmp.lt.s32.totalorder %s681_s7, %s677_s4 }
 0x114   : > { %p679_p10 = pnand %p678_p9, %p810_p4 }
 0x115   : > { %p684_p0 = por %p683_p13, %p682_p12 }
 0x116   : > { %p680_p11 = pneg %p679_p10 }
 0x118   : > { %p685_p1 = pnand %p684_p0, %p680_p11 }
 0x11a   : > { %688 = shalt.err (!%p685_p1)
}
 0x11b   : > { %575 = dma.vmem_to_hbm [thread:$0]  (%p810_p4), %s421_s26, 16, %s881_s19, %s390_s21  }
 0x11c PF: > { %p585_p2 = scmp.ge.s32.totalorder %s743_s17, 2  ;;  %s432_s11 = sand.u32 1, %s723_s12  }
 0x11d   : > { %s433_s18 = scalar_lea.sflag [#allocation4], %s432_s11 }
 0x11e   : > { %p579_p3 = pnand %p585_p2, %p817_p8 }
 0x120   : > { %p580_p5 = pneg %p579_p3 }
 0x122   : > { %714 = dma.done.wait (%p580_p5), %s433_s18, 1024  }
 0x123   : > { %716 = vsyncadd (%p580_p5), %s433_s18, 4294966272  ;;  %s442_s23 = scalar_lea.sflag [#allocation6], %s432_s11 }
 0x124   : > { %718 = dma.done.wait (%p580_p5), %s442_s23, 16  }
 0x125   : > { %720 = vsyncadd (%p580_p5), %s442_s23, 4294967280  ;;  %s20_s17 = sadd.s32 1, %s743_s17   ;;  %s928_s12 = smov %s727_s13 }
 0x126   : > { %p17_p6 = scmp.ge.s32.totalorder %s20_s17, 4   ;;  %s929_s13 = smov %s731_s14 }
 0x127   : > { %s930_s14 = smov %s823_s25  ;;  %s931_s15 = smov %s739_s16 }
 0x128   : > { %s932_s16 = smov %s934_s20  ;;  %19 = sbr.rel (!%p17_p6) target bundleno = 6 (0x6), region = 84 }
 0x12d   :  { %446 = vsyncpa [#allocation4], 1 }
 0x12e   :  { %448 = vsyncpa [#allocation4 + $0x1], 1 }
 0x12f   :  { %449 = vsyncpa [#allocation6], 1 }
 0x130   :  { %451 = vsyncpa [#allocation6 + $0x1], 1 }

</bundles_post_ra>
